<compile_context>
chip_gen: v7x
topology: tpu7x:2x2x1
jax: 0.10.0
libtpu: 0.0.40
codegen_flags: <defaults>
</compile_context>

<pallas_src>
import functools

import jax
import jax.numpy as jnp
from jax.experimental import pallas as pl
from jax.experimental.pallas import tpu as pltpu

LANE = 128      # vreg lane width  (last dim)
SUBLANE = 8     # vreg sublane width (second-to-last dim)


def _round_up(x: int, m: int) -> int:
    return ((x + m - 1) // m) * m


# ----------------------------------------------------------------------------
# Fused MLP kernel: all trunk layers + head chained in one kernel body.
# Intermediate activations never leave vregs/VMEM.
# ----------------------------------------------------------------------------
def _fused_mlp_kernel(x_ref, w0_ref, b0_ref, wm_ref, bm_ref, wh_ref, bh_ref,
                      o_ref, *, num_mid: int):
    # x_ref : [tb, Din_p]   f32
    # w0_ref: [Din_p, H_p]  bf16     b0_ref: [1, H_p]     f32
    # wm_ref: [Lm, H_p, H_p] bf16    bm_ref: [Lm, 1, H_p] f32
    # wh_ref: [H_p, Dout_p] bf16     bh_ref: [1, Dout_p]  f32
    # o_ref : [tb, Dout_p]  f32

    # First trunk layer (cast to bf16 only at the MXU inputs; f32 accumulate).
    h = jnp.dot(x_ref[...].astype(jnp.bfloat16), w0_ref[...],
                preferred_element_type=jnp.float32) + b0_ref[...]
    h = jnp.maximum(h, 0.0)

    # Remaining trunk layers (static unroll; num_mid is small).
    for li in range(num_mid):
        h = jnp.dot(h.astype(jnp.bfloat16), wm_ref[li],
                    preferred_element_type=jnp.float32) + bm_ref[li]
        h = jnp.maximum(h, 0.0)

    # Head (no ReLU).
    out = jnp.dot(h.astype(jnp.bfloat16), wh_ref[...],
                  preferred_element_type=jnp.float32) + bh_ref[...]
    o_ref[...] = out.astype(o_ref.dtype)


def fused_mlp_forward(x, packed, num_mid, out_dim, *, tb=None):
    """Run the whole MLP in a single pallas_call, tiled over the batch.

    x:       [B, Din] f32 (unpadded)
    packed:  (w0, b0, wm, bm, wh, bh) padded/packed parameter slabs
    returns: [B, out_dim] f32
    """
    w0, b0, wm, bm, wh, bh = packed
    B, Din = x.shape
    Din_p, H_p = w0.shape
    Dout_p = wh.shape[1]
    Lm = wm.shape[0]

    # Batch tiling: MXU-sized tiles for real batches, a single grid step for
    # small ones (per-step pipeline overhead ~0.35us would otherwise dominate).
    if tb is None:
        tb = _round_up(max(B, SUBLANE), SUBLANE) if B <= 256 else 256
    assert tb % SUBLANE == 0
    Bp = _round_up(max(B, tb), tb)
    # NOTE: on v7x (2 TensorCores) prefer Bp // tb >= 2 (and even) for real
    # workloads so both cores get balanced work under the 'parallel' batch axis.

    # Skip the extra HBM round trip when the input is already tile-aligned.
    if Bp == B and Din_p == Din:
        x_p = x
    else:
        x_p = jnp.zeros((Bp, Din_p), x.dtype).at[:B, :Din].set(x)

    # Explicit VMEM budget: weights/biases (allow double-buffer fallback) +
    # double-buffered activation tiles + headroom, clamped to sane bounds.
    wb_bytes = sum(int(a.size) * a.dtype.itemsize for a in (w0, b0, wm, bm, wh, bh))
    act_bytes = 2 * tb * (Din_p + Dout_p) * x.dtype.itemsize
    vmem_limit = int(min(max(2 * wb_bytes + act_bytes + (16 << 20), 32 << 20),
                         100 << 20))

    kernel = functools.partial(_fused_mlp_kernel, num_mid=num_mid)

    def build(single_buffer_weights):
        def wspec(shape):
            ndim = len(shape)
            idx = lambda i: (0,) * ndim       # constant -> fetched once, VMEM-resident
            if single_buffer_weights:
                return pl.BlockSpec(shape, idx, pipeline_mode=pl.Buffered(1))
            return pl.BlockSpec(shape, idx)

        return pl.pallas_call(
            kernel,
            out_shape=jax.ShapeDtypeStruct((Bp, Dout_p), x.dtype),
            grid=(Bp // tb,),
            in_specs=[
                pl.BlockSpec((tb, Din_p), lambda i: (i, 0)),   # activations
                wspec((Din_p, H_p)),                           # first-layer W
                wspec((1, H_p)),                               # first-layer b
                wspec((Lm, H_p, H_p)),                         # mid-layer W stack
                wspec((Lm, 1, H_p)),                           # mid-layer b stack
                wspec((H_p, Dout_p)),                          # head W
                wspec((1, Dout_p)),                            # head b
            ],
            out_specs=pl.BlockSpec((tb, Dout_p), lambda i: (i, 0)),
            compiler_params=pltpu.CompilerParams(
                dimension_semantics=("parallel",),
                vmem_limit_bytes=vmem_limit,
            ),
        )

    try:
        out_p = build(single_buffer_weights=True)(x_p, w0, b0, wm, bm, wh, bh)
    except Exception:
        # Fallback if this Pallas build rejects Buffered(1): default
        # double-buffered weight residency (costs VMEM, not correctness).
        out_p = build(single_buffer_weights=False)(x_p, w0, b0, wm, bm, wh, bh)

    if Bp == B and Dout_p == out_dim:
        return out_p
    return out_p[:B, :out_dim]


# ----------------------------------------------------------------------------
# Parameter init (mirrors initialize_weights(): xavier_normal_ weights,
# uniform_[0,1) biases) and one-time padded packing.
# ----------------------------------------------------------------------------
def _xavier_normal(key, fan_in, fan_out, dtype=jnp.float32):
    std = (2.0 / (fan_in + fan_out)) ** 0.5
    # PyTorch Linear weight is [out, in]; stored transposed as [in, out] so
    # the kernel computes y = x @ W + b directly.
    return std * jax.random.normal(key, (fan_in, fan_out), dtype=dtype)


def init_params(key, in_dim, h_dim, out_dim, num_layers, dtype=jnp.float32):
    params = []
    dims = [in_dim] + [h_dim] * num_layers
    for li in range(num_layers):
        key, kw, kb = jax.random.split(key, 3)
        params.append((_xavier_normal(kw, dims[li], dims[li + 1], dtype),
                       jax.random.uniform(kb, (1, dims[li + 1]), dtype=dtype)))
    key, kw, kb = jax.random.split(key, 3)
    params.append((_xavier_normal(kw, h_dim, out_dim, dtype),
                   jax.random.uniform(kb, (1, out_dim), dtype=dtype)))
    return params


def pack_params(params, w_dtype=jnp.bfloat16, b_dtype=jnp.float32):
    """Pad in/hidden/out feature dims independently to multiples of 128
    (zero padding is mathematically inert) and cast weights to bf16 for the
    MXU; biases stay f32 so the elementwise path is f32 (v5e-safe)."""
    w0, b0 = params[0]
    wh, bh = params[-1]
    mids = params[1:-1]
    in_dim, h_dim = w0.shape
    out_dim = wh.shape[1]
    din_p, h_p, dout_p = (_round_up(d, LANE) for d in (in_dim, h_dim, out_dim))

    w0_p = jnp.zeros((din_p, h_p), w_dtype).at[:in_dim, :h_dim].set(w0.astype(w_dtype))
    b0_p = jnp.zeros((1, h_p), b_dtype).at[:, :h_dim].set(b0.astype(b_dtype))

    num_mid = len(mids)
    lm = max(num_mid, 1)   # keep a non-empty (unused) slab when num_mid == 0
    wm_p = jnp.zeros((lm, h_p, h_p), w_dtype)
    bm_p = jnp.zeros((lm, 1, h_p), b_dtype)
    for li, (w, b) in enumerate(mids):
        wm_p = wm_p.at[li, :h_dim, :h_dim].set(w.astype(w_dtype))
        bm_p = bm_p.at[li, 0, :h_dim].set(b[0].astype(b_dtype))

    wh_p = jnp.zeros((h_p, dout_p), w_dtype).at[:h_dim, :out_dim].set(wh.astype(w_dtype))
    bh_p = jnp.zeros((1, dout_p), b_dtype).at[:, :out_dim].set(bh.astype(b_dtype))
    return (w0_p, b0_p, wm_p, bm_p, wh_p, bh_p), num_mid


# ----------------------------------------------------------------------------
# Pure-JAX reference with the same bf16-at-dot numerics as the kernel.
# ----------------------------------------------------------------------------
def reference_forward(x, params, dot_dtype=jnp.bfloat16):
    h = x
    for (w, b) in params[:-1]:
        h = jnp.dot(h.astype(dot_dtype), w.astype(dot_dtype),
                    preferred_element_type=jnp.float32) + b
        h = jnp.maximum(h, 0.0)
    w, b = params[-1]
    return jnp.dot(h.astype(dot_dtype), w.astype(dot_dtype),
                   preferred_element_type=jnp.float32) + b


if __name__ == "__main__":
    # Small shapes consistent with the module's forward semantics.
    batch, in_dim, h_dim, out_dim, num_layers = 16, 32, 32, 4, 3

    key = jax.random.PRNGKey(0)
    key, kx = jax.random.split(key)
    x = jax.random.normal(kx, (batch, in_dim), dtype=jnp.float32)

    params = init_params(key, in_dim, h_dim, out_dim, num_layers)
    packed, num_mid = pack_params(params)          # one-time padded/bf16 packing

    # Toy shapes -> wrapper picks tb=16, grid=(1,): one grid step.
    out = fused_mlp_forward(x, packed, num_mid, out_dim)
    out = jax.block_until_ready(out)

    ref = reference_forward(x, params)
    assert out.shape == (batch, out_dim)
    assert jnp.allclose(out, ref, atol=1e-3, rtol=1e-3), float(
        jnp.max(jnp.abs(out - ref)))

    print("KERNEL_OK")
</pallas_src>

<mosaic_0001>
module attributes {stable_mosaic.version = 11 : i64} {
  func.func @_fused_mlp_kernel(%arg0: i32, %arg1: memref<16x128xf32, #tpu.memory_space<vmem>>, %arg2: memref<128x128xbf16, #tpu.memory_space<vmem>>, %arg3: memref<1x128xf32, #tpu.memory_space<vmem>>, %arg4: memref<2x128x128xbf16, #tpu.memory_space<vmem>>, %arg5: memref<2x1x128xf32, #tpu.memory_space<vmem>>, %arg6: memref<128x128xbf16, #tpu.memory_space<vmem>>, %arg7: memref<1x128xf32, #tpu.memory_space<vmem>>, %arg8: memref<16x128xf32, #tpu.memory_space<vmem>>) attributes {dimension_semantics = [#tpu.dimension_semantics<parallel>], iteration_bounds = array<i64: 1>, scalar_prefetch = 0 : i64, scratch_operands = 0 : i64, tpu.core_type = #tpu.core_type<tc>, window_params = [{transform_indices = @transform_0, window_bounds = array<i64: 16, 128>}, {pipeline_mode = #tpu.pipeline_mode<synchronous>, transform_indices = @transform_1, window_bounds = array<i64: 128, 128>}, {pipeline_mode = #tpu.pipeline_mode<synchronous>, transform_indices = @transform_2, window_bounds = array<i64: 1, 128>}, {pipeline_mode = #tpu.pipeline_mode<synchronous>, transform_indices = @transform_3, window_bounds = array<i64: 2, 128, 128>}, {pipeline_mode = #tpu.pipeline_mode<synchronous>, transform_indices = @transform_4, window_bounds = array<i64: 2, 1, 128>}, {pipeline_mode = #tpu.pipeline_mode<synchronous>, transform_indices = @transform_5, window_bounds = array<i64: 128, 128>}, {pipeline_mode = #tpu.pipeline_mode<synchronous>, transform_indices = @transform_6, window_bounds = array<i64: 1, 128>}, {transform_indices = @transform_7, window_bounds = array<i64: 16, 128>}]} {
    %c0 = arith.constant 0 : index
    %c0_0 = arith.constant 0 : index
    %0 = vector.load %arg1[%c0, %c0_0] : memref<16x128xf32, #tpu.memory_space<vmem>>, vector<16x128xf32>
    %1 = arith.truncf %0 : vector<16x128xf32> to vector<16x128xbf16>
    %c0_1 = arith.constant 0 : index
    %c0_2 = arith.constant 0 : index
    %2 = vector.load %arg2[%c0_1, %c0_2] : memref<128x128xbf16, #tpu.memory_space<vmem>>, vector<128x128xbf16>
    %cst = arith.constant dense<0.000000e+00> : vector<16x128xf32>
    %3 = tpu.matmul %1, %2, %cst {dimension_numbers = #tpu.dot_dimension_numbers<[1], [0], [0], [1], [0, 0, 1, 1], [], []>} : vector<16x128xbf16>, vector<128x128xbf16>, vector<16x128xf32> -> vector<16x128xf32>
    %c0_3 = arith.constant 0 : index
    %c0_4 = arith.constant 0 : index
    %4 = vector.load %arg3[%c0_3, %c0_4] : memref<1x128xf32, #tpu.memory_space<vmem>>, vector<1x128xf32>
    %5 = vector.broadcast %4 : vector<1x128xf32> to vector<16x128xf32>
    %6 = arith.addf %3, %5 : vector<16x128xf32>
    %cst_5 = arith.constant 0.000000e+00 : f32
    %7 = vector.broadcast %cst_5 : f32 to vector<16x128xf32>
    %8 = arith.maximumf %6, %7 : vector<16x128xf32>
    %9 = arith.truncf %8 : vector<16x128xf32> to vector<16x128xbf16>
    %c0_6 = arith.constant 0 : index
    %c0_7 = arith.constant 0 : index
    %c0_8 = arith.constant 0 : index
    %10 = vector.load %arg4[%c0_6, %c0_7, %c0_8] : memref<2x128x128xbf16, #tpu.memory_space<vmem>>, vector<1x128x128xbf16>
    %11 = vector.shape_cast %10 : vector<1x128x128xbf16> to vector<128x128xbf16>
    %cst_9 = arith.constant dense<0.000000e+00> : vector<16x128xf32>
    %12 = tpu.matmul %9, %11, %cst_9 {dimension_numbers = #tpu.dot_dimension_numbers<[1], [0], [0], [1], [0, 0, 1, 1], [], []>} : vector<16x128xbf16>, vector<128x128xbf16>, vector<16x128xf32> -> vector<16x128xf32>
    %c0_10 = arith.constant 0 : index
    %c0_11 = arith.constant 0 : index
    %c0_12 = arith.constant 0 : index
    %13 = vector.load %arg5[%c0_10, %c0_11, %c0_12] : memref<2x1x128xf32, #tpu.memory_space<vmem>>, vector<1x1x128xf32>
    %14 = vector.shape_cast %13 : vector<1x1x128xf32> to vector<1x128xf32>
    %15 = vector.broadcast %14 : vector<1x128xf32> to vector<16x128xf32>
    %16 = arith.addf %12, %15 : vector<16x128xf32>
    %cst_13 = arith.constant 0.000000e+00 : f32
    %17 = vector.broadcast %cst_13 : f32 to vector<16x128xf32>
    %18 = arith.maximumf %16, %17 : vector<16x128xf32>
    %19 = arith.truncf %18 : vector<16x128xf32> to vector<16x128xbf16>
    %c1 = arith.constant 1 : index
    %c0_14 = arith.constant 0 : index
    %c0_15 = arith.constant 0 : index
    %20 = vector.load %arg4[%c1, %c0_14, %c0_15] : memref<2x128x128xbf16, #tpu.memory_space<vmem>>, vector<1x128x128xbf16>
    %21 = vector.shape_cast %20 : vector<1x128x128xbf16> to vector<128x128xbf16>
    %cst_16 = arith.constant dense<0.000000e+00> : vector<16x128xf32>
    %22 = tpu.matmul %19, %21, %cst_16 {dimension_numbers = #tpu.dot_dimension_numbers<[1], [0], [0], [1], [0, 0, 1, 1], [], []>} : vector<16x128xbf16>, vector<128x128xbf16>, vector<16x128xf32> -> vector<16x128xf32>
    %c1_17 = arith.constant 1 : index
    %c0_18 = arith.constant 0 : index
    %c0_19 = arith.constant 0 : index
    %23 = vector.load %arg5[%c1_17, %c0_18, %c0_19] : memref<2x1x128xf32, #tpu.memory_space<vmem>>, vector<1x1x128xf32>
    %24 = vector.shape_cast %23 : vector<1x1x128xf32> to vector<1x128xf32>
    %25 = vector.broadcast %24 : vector<1x128xf32> to vector<16x128xf32>
    %26 = arith.addf %22, %25 : vector<16x128xf32>
    %cst_20 = arith.constant 0.000000e+00 : f32
    %27 = vector.broadcast %cst_20 : f32 to vector<16x128xf32>
    %28 = arith.maximumf %26, %27 : vector<16x128xf32>
    %29 = arith.truncf %28 : vector<16x128xf32> to vector<16x128xbf16>
    %c0_21 = arith.constant 0 : index
    %c0_22 = arith.constant 0 : index
    %30 = vector.load %arg6[%c0_21, %c0_22] : memref<128x128xbf16, #tpu.memory_space<vmem>>, vector<128x128xbf16>
    %cst_23 = arith.constant dense<0.000000e+00> : vector<16x128xf32>
    %31 = tpu.matmul %29, %30, %cst_23 {dimension_numbers = #tpu.dot_dimension_numbers<[1], [0], [0], [1], [0, 0, 1, 1], [], []>} : vector<16x128xbf16>, vector<128x128xbf16>, vector<16x128xf32> -> vector<16x128xf32>
    %c0_24 = arith.constant 0 : index
    %c0_25 = arith.constant 0 : index
    %32 = vector.load %arg7[%c0_24, %c0_25] : memref<1x128xf32, #tpu.memory_space<vmem>>, vector<1x128xf32>
    %33 = vector.broadcast %32 : vector<1x128xf32> to vector<16x128xf32>
    %34 = arith.addf %31, %33 : vector<16x128xf32>
    %c0_26 = arith.constant 0 : index
    %c0_27 = arith.constant 0 : index
    %35 = vector.load %arg8[%c0_26, %c0_27] : memref<16x128xf32, #tpu.memory_space<vmem>>, vector<16x128xf32>
    tpu.vector_store %arg8[%c0_26, %c0_27], %34 {strides = array<i32>} : memref<16x128xf32, #tpu.memory_space<vmem>>, vector<16x128xf32>,
    return
  }
  func.func @transform_0(%arg0: i32) -> (i32, i32) {
    %c0_i32 = arith.constant 0 : i32
    %c0_i32_0 = arith.constant 0 : i32
    return %arg0, %c0_i32 : i32, i32
  }
  func.func @transform_1(%arg0: i32) -> (i32, i32) {
    %c0_i32 = arith.constant 0 : i32
    %c0_i32_0 = arith.constant 0 : i32
    %c0_i32_1 = arith.constant 0 : i32
    return %c0_i32, %c0_i32_0 : i32, i32
  }
  func.func @transform_2(%arg0: i32) -> (i32, i32) {
    %c0_i32 = arith.constant 0 : i32
    %c0_i32_0 = arith.constant 0 : i32
    %c0_i32_1 = arith.constant 0 : i32
    return %c0_i32, %c0_i32_0 : i32, i32
  }
  func.func @transform_3(%arg0: i32) -> (i32, i32, i32) {
    %c0_i32 = arith.constant 0 : i32
    %c0_i32_0 = arith.constant 0 : i32
    %c0_i32_1 = arith.constant 0 : i32
    %c0_i32_2 = arith.constant 0 : i32
    return %c0_i32, %c0_i32_0, %c0_i32_1 : i32, i32, i32
  }
  func.func @transform_4(%arg0: i32) -> (i32, i32, i32) {
    %c0_i32 = arith.constant 0 : i32
    %c0_i32_0 = arith.constant 0 : i32
    %c0_i32_1 = arith.constant 0 : i32
    %c0_i32_2 = arith.constant 0 : i32
    return %c0_i32, %c0_i32_0, %c0_i32_1 : i32, i32, i32
  }
  func.func @transform_5(%arg0: i32) -> (i32, i32) {
    %c0_i32 = arith.constant 0 : i32
    %c0_i32_0 = arith.constant 0 : i32
    %c0_i32_1 = arith.constant 0 : i32
    return %c0_i32, %c0_i32_0 : i32, i32
  }
  func.func @transform_6(%arg0: i32) -> (i32, i32) {
    %c0_i32 = arith.constant 0 : i32
    %c0_i32_0 = arith.constant 0 : i32
    %c0_i32_1 = arith.constant 0 : i32
    return %c0_i32, %c0_i32_0 : i32, i32
  }
  func.func @transform_7(%arg0: i32) -> (i32, i32) {
    %c0_i32 = arith.constant 0 : i32
    %c0_i32_0 = arith.constant 0 : i32
    return %arg0, %c0_i32 : i32, i32
  }
}

module attributes {stable_mosaic.version = 11 : i64} {
  func.func @_fused_mlp_kernel(%arg0: i32, %arg1: memref<16x128xf32, #tpu.memory_space<vmem>>, %arg2: memref<128x128xbf16, #tpu.memory_space<vmem>>, %arg3: memref<1x128xf32, #tpu.memory_space<vmem>>, %arg4: memref<2x128x128xbf16, #tpu.memory_space<vmem>>, %arg5: memref<2x1x128xf32, #tpu.memory_space<vmem>>, %arg6: memref<128x128xbf16, #tpu.memory_space<vmem>>, %arg7: memref<1x128xf32, #tpu.memory_space<vmem>>, %arg8: memref<16x128xf32, #tpu.memory_space<vmem>>) attributes {dimension_semantics = [#tpu.dimension_semantics<parallel>], iteration_bounds = array<i64: 1>, scalar_prefetch = 0 : i64, scratch_operands = 0 : i64, tpu.core_type = #tpu.core_type<tc>, window_params = [{transform_indices = @transform_0, window_bounds = array<i64: 16, 128>}, {pipeline_mode = #tpu.pipeline_mode<synchronous>, transform_indices = @transform_1, window_bounds = array<i64: 128, 128>}, {pipeline_mode = #tpu.pipeline_mode<synchronous>, transform_indices = @transform_2, window_bounds = array<i64: 1, 128>}, {pipeline_mode = #tpu.pipeline_mode<synchronous>, transform_indices = @transform_3, window_bounds = array<i64: 2, 128, 128>}, {pipeline_mode = #tpu.pipeline_mode<synchronous>, transform_indices = @transform_4, window_bounds = array<i64: 2, 1, 128>}, {pipeline_mode = #tpu.pipeline_mode<synchronous>, transform_indices = @transform_5, window_bounds = array<i64: 128, 128>}, {pipeline_mode = #tpu.pipeline_mode<synchronous>, transform_indices = @transform_6, window_bounds = array<i64: 1, 128>}, {transform_indices = @transform_7, window_bounds = array<i64: 16, 128>}]} {
    %c0 = arith.constant 0 : index
    %c0_0 = arith.constant 0 : index
    %0 = vector.load %arg1[%c0, %c0_0] : memref<16x128xf32, #tpu.memory_space<vmem>>, vector<16x128xf32>
    %1 = arith.truncf %0 : vector<16x128xf32> to vector<16x128xbf16>
    %c0_1 = arith.constant 0 : index
    %c0_2 = arith.constant 0 : index
    %2 = vector.load %arg2[%c0_1, %c0_2] : memref<128x128xbf16, #tpu.memory_space<vmem>>, vector<128x128xbf16>
    %cst = arith.constant dense<0.000000e+00> : vector<16x128xf32>
    %3 = tpu.matmul %1, %2, %cst {dimension_numbers = #tpu.dot_dimension_numbers<[1], [0], [0], [1], [0, 0, 1, 1], [], []>} : vector<16x128xbf16>, vector<128x128xbf16>, vector<16x128xf32> -> vector<16x128xf32>
    %c0_3 = arith.constant 0 : index
    %c0_4 = arith.constant 0 : index
    %4 = vector.load %arg3[%c0_3, %c0_4] : memref<1x128xf32, #tpu.memory_space<vmem>>, vector<1x128xf32>
    %5 = vector.broadcast %4 : vector<1x128xf32> to vector<16x128xf32>
    %6 = arith.addf %3, %5 : vector<16x128xf32>
    %cst_5 = arith.constant 0.000000e+00 : f32
    %7 = vector.broadcast %cst_5 : f32 to vector<16x128xf32>
    %8 = arith.maximumf %6, %7 : vector<16x128xf32>
    %9 = arith.truncf %8 : vector<16x128xf32> to vector<16x128xbf16>
    %c0_6 = arith.constant 0 : index
    %c0_7 = arith.constant 0 : index
    %c0_8 = arith.constant 0 : index
    %10 = vector.load %arg4[%c0_6, %c0_7, %c0_8] : memref<2x128x128xbf16, #tpu.memory_space<vmem>>, vector<1x128x128xbf16>
    %11 = vector.shape_cast %10 : vector<1x128x128xbf16> to vector<128x128xbf16>
    %cst_9 = arith.constant dense<0.000000e+00> : vector<16x128xf32>
    %12 = tpu.matmul %9, %11, %cst_9 {dimension_numbers = #tpu.dot_dimension_numbers<[1], [0], [0], [1], [0, 0, 1, 1], [], []>} : vector<16x128xbf16>, vector<128x128xbf16>, vector<16x128xf32> -> vector<16x128xf32>
    %c0_10 = arith.constant 0 : index
    %c0_11 = arith.constant 0 : index
    %c0_12 = arith.constant 0 : index
    %13 = vector.load %arg5[%c0_10, %c0_11, %c0_12] : memref<2x1x128xf32, #tpu.memory_space<vmem>>, vector<1x1x128xf32>
    %14 = vector.shape_cast %13 : vector<1x1x128xf32> to vector<1x128xf32>
    %15 = vector.broadcast %14 : vector<1x128xf32> to vector<16x128xf32>
    %16 = arith.addf %12, %15 : vector<16x128xf32>
    %cst_13 = arith.constant 0.000000e+00 : f32
    %17 = vector.broadcast %cst_13 : f32 to vector<16x128xf32>
    %18 = arith.maximumf %16, %17 : vector<16x128xf32>
    %19 = arith.truncf %18 : vector<16x128xf32> to vector<16x128xbf16>
    %c1 = arith.constant 1 : index
    %c0_14 = arith.constant 0 : index
    %c0_15 = arith.constant 0 : index
    %20 = vector.load %arg4[%c1, %c0_14, %c0_15] : memref<2x128x128xbf16, #tpu.memory_space<vmem>>, vector<1x128x128xbf16>
    %21 = vector.shape_cast %20 : vector<1x128x128xbf16> to vector<128x128xbf16>
    %cst_16 = arith.constant dense<0.000000e+00> : vector<16x128xf32>
    %22 = tpu.matmul %19, %21, %cst_16 {dimension_numbers = #tpu.dot_dimension_numbers<[1], [0], [0], [1], [0, 0, 1, 1], [], []>} : vector<16x128xbf16>, vector<128x128xbf16>, vector<16x128xf32> -> vector<16x128xf32>
    %c1_17 = arith.constant 1 : index
    %c0_18 = arith.constant 0 : index
    %c0_19 = arith.constant 0 : index
    %23 = vector.load %arg5[%c1_17, %c0_18, %c0_19] : memref<2x1x128xf32, #tpu.memory_space<vmem>>, vector<1x1x128xf32>
    %24 = vector.shape_cast %23 : vector<1x1x128xf32> to vector<1x128xf32>
    %25 = vector.broadcast %24 : vector<1x128xf32> to vector<16x128xf32>
    %26 = arith.addf %22, %25 : vector<16x128xf32>
    %cst_20 = arith.constant 0.000000e+00 : f32
    %27 = vector.broadcast %cst_20 : f32 to vector<16x128xf32>
    %28 = arith.maximumf %26, %27 : vector<16x128xf32>
    %29 = arith.truncf %28 : vector<16x128xf32> to vector<16x128xbf16>
    %c0_21 = arith.constant 0 : index
    %c0_22 = arith.constant 0 : index
    %30 = vector.load %arg6[%c0_21, %c0_22] : memref<128x128xbf16, #tpu.memory_space<vmem>>, vector<128x128xbf16>
    %cst_23 = arith.constant dense<0.000000e+00> : vector<16x128xf32>
    %31 = tpu.matmul %29, %30, %cst_23 {dimension_numbers = #tpu.dot_dimension_numbers<[1], [0], [0], [1], [0, 0, 1, 1], [], []>} : vector<16x128xbf16>, vector<128x128xbf16>, vector<16x128xf32> -> vector<16x128xf32>
    %c0_24 = arith.constant 0 : index
    %c0_25 = arith.constant 0 : index
    %32 = vector.load %arg7[%c0_24, %c0_25] : memref<1x128xf32, #tpu.memory_space<vmem>>, vector<1x128xf32>
    %33 = vector.broadcast %32 : vector<1x128xf32> to vector<16x128xf32>
    %34 = arith.addf %31, %33 : vector<16x128xf32>
    %c0_26 = arith.constant 0 : index
    %c0_27 = arith.constant 0 : index
    %35 = vector.load %arg8[%c0_26, %c0_27] : memref<16x128xf32, #tpu.memory_space<vmem>>, vector<16x128xf32>
    tpu.vector_store %arg8[%c0_26, %c0_27], %34 {strides = array<i32>} : memref<16x128xf32, #tpu.memory_space<vmem>>, vector<16x128xf32>,
    return
  }
  func.func @transform_0(%arg0: i32) -> (i32, i32) {
    %c0_i32 = arith.constant 0 : i32
    %c0_i32_0 = arith.constant 0 : i32
    return %arg0, %c0_i32 : i32, i32
  }
  func.func @transform_1(%arg0: i32) -> (i32, i32) {
    %c0_i32 = arith.constant 0 : i32
    %c0_i32_0 = arith.constant 0 : i32
    %c0_i32_1 = arith.constant 0 : i32
    return %c0_i32, %c0_i32_0 : i32, i32
  }
  func.func @transform_2(%arg0: i32) -> (i32, i32) {
    %c0_i32 = arith.constant 0 : i32
    %c0_i32_0 = arith.constant 0 : i32
    %c0_i32_1 = arith.constant 0 : i32
    return %c0_i32, %c0_i32_0 : i32, i32
  }
  func.func @transform_3(%arg0: i32) -> (i32, i32, i32) {
    %c0_i32 = arith.constant 0 : i32
    %c0_i32_0 = arith.constant 0 : i32
    %c0_i32_1 = arith.constant 0 : i32
    %c0_i32_2 = arith.constant 0 : i32
    return %c0_i32, %c0_i32_0, %c0_i32_1 : i32, i32, i32
  }
  func.func @transform_4(%arg0: i32) -> (i32, i32, i32) {
    %c0_i32 = arith.constant 0 : i32
    %c0_i32_0 = arith.constant 0 : i32
    %c0_i32_1 = arith.constant 0 : i32
    %c0_i32_2 = arith.constant 0 : i32
    return %c0_i32, %c0_i32_0, %c0_i32_1 : i32, i32, i32
  }
  func.func @transform_5(%arg0: i32) -> (i32, i32) {
    %c0_i32 = arith.constant 0 : i32
    %c0_i32_0 = arith.constant 0 : i32
    %c0_i32_1 = arith.constant 0 : i32
    return %c0_i32, %c0_i32_0 : i32, i32
  }
  func.func @transform_6(%arg0: i32) -> (i32, i32) {
    %c0_i32 = arith.constant 0 : i32
    %c0_i32_0 = arith.constant 0 : i32
    %c0_i32_1 = arith.constant 0 : i32
    return %c0_i32, %c0_i32_0 : i32, i32
  }
  func.func @transform_7(%arg0: i32) -> (i32, i32) {
    %c0_i32 = arith.constant 0 : i32
    %c0_i32_0 = arith.constant 0 : i32
    return %arg0, %c0_i32 : i32, i32
  }
}

</mosaic_0001>

<bundles_post_ra>
// kernel: tpu_custom_call.1
= control target key start
LH: loop header
LB: loop body
LE: loop exit
PB: predicated region body
PF: predicated region fallthrough
CT: control target
= control target key end

     0   :  { %12 = vsyncpa [#allocation3], 0  ;;  %s1065_s0 = inlined_call_operand.hbm [shape: f32[16,128], index: 0, kind: input, shape index: {}]   ;;  %s1066_s1 = inlined_call_operand.hbm [shape: bf16[128,128], index: 1, kind: input, shape index: {}]   ;;  %s1067_s2 = inlined_call_operand.vmem [shape: f32[1,128], index: 2, kind: input, shape index: {}]   ;;  %s1068_s3 = inlined_call_operand.hbm [shape: bf16[2,128,128], index: 3, kind: input, shape index: {}]   ;;  %s1069_s4 = inlined_call_operand.vmem [shape: f32[2,1,128], index: 4, kind: input, shape index: {}]   ;;  %s1070_s5 = inlined_call_operand.hbm [shape: bf16[128,128], index: 5, kind: input, shape index: {}]   ;;  %s1071_s6 = inlined_call_operand.vmem [shape: f32[1,128], index: 6, kind: input, shape index: {}]   ;;  %s1072_s7 = inlined_call_operand.hbm [shape: f32[16,128], index: 7, kind: output, shape index: {}]  }
   0x1   :  { %13 = vsyncpa [#allocation6], 0 }
   0x2   :  { %14 = vsyncpa [#allocation9], 0 }
   0x3   :  { %15 = vsyncpa [#allocation4], 0  ;;  %s880_s24 = smov [#allocation5]   ;;  %s762_s28 = scalar_lea.hbm %s1066_s1, 1024 }
   0x4   :  { %s33_s25 = sshll.u32 %s880_s24, 4  ;;  %p763_p0 = scmp.ne.s32.totalorder %s1066_s1, %s762_s28  ;;  %s34_s25 = int_to_ptr.vmem [resolvable:$true] %s33_s25 }
   0x5   :  { %p766_p1 = scmp.lt.u32.totalorder %s762_s28, %s1066_s1 }
   0x7   :  { %p768_p2 = pnand %p766_p1, %p763_p0 }
   0x9   :  { %771 = shalt.err (!%p768_p2)
}
   0xa   :  { %s772_s10 = scalar_lea.vmem %s34_s25, 1024  ;;  %p777_p4 = scmp.lt.s32.totalorder %s34_s25, %s34_s25 }
   0xb   :  { %p773_p3 = scmp.ne.s32.totalorder %s34_s25, %s772_s10  ;;  %p778_p5 = scmp.lt.s32.totalorder %s772_s10, %s772_s10 }
   0xd   :  { %p779_p6 = por %p778_p5, %p777_p4 }
   0xf   :  { %p780_p7 = pnand %p779_p6, %p773_p3 }
  0x11   :  { %783 = shalt.err (!%p780_p7)
}
  0x12   :  { %s881_s11 = smov 64   ;;  %s882_s12 = smov 4  }
  0x13   :  { %39 = dma.hbm_to_vmem [thread:$0]  %s1066_s1, 1024, %s34_s25, [#allocation6], %s881_s11, %s881_s11, %s882_s12  }
  0x14   :  { %s883_s15 = smov [#allocation2]   ;;  %s784_s19 = scalar_lea.hbm %s1065_s0, 256 }
  0x15   :  { %s21_s16 = sshll.u32 %s883_s15, 4  ;;  %p785_p8 = scmp.ne.s32.totalorder %s1065_s0, %s784_s19  ;;  %s22_s16 = int_to_ptr.vmem [resolvable:$true] %s21_s16 }
  0x16   :  { %p788_p9 = scmp.lt.u32.totalorder %s784_s19, %s1065_s0 }
  0x18   :  { %p790_p10 = pnand %p788_p9, %p785_p8 }
  0x1a   :  { %793 = shalt.err (!%p790_p10)
}
  0x1b   :  { %s794_s24 = scalar_lea.vmem %s22_s16, 256  ;;  %p799_p12 = scmp.lt.s32.totalorder %s22_s16, %s22_s16 }
  0x1c   :  { %p795_p11 = scmp.ne.s32.totalorder %s22_s16, %s794_s24  ;;  %p800_p13 = scmp.lt.s32.totalorder %s794_s24, %s794_s24 }
  0x1e   :  { %p801_p0 = por %p800_p13, %p799_p12 }
  0x20   :  { %p802_p1 = pnand %p801_p0, %p795_p11 }
  0x22   :  { %805 = shalt.err (!%p802_p1)
}
  0x23   :  { %s884_s1 = smov 128   ;;  %s885_s25 = smov 8  }
  0x24   :  { %27 = dma.hbm_to_vmem [thread:$0]  %s1065_s0, 256, %s22_s16, [#allocation3], %s884_s1, %s884_s1, %s885_s25  }
  0x25   :  { %s886_s28 = smov [#allocation7]   ;;  %s887_s30 = smov [#allocation8]  }
  0x26   :  { %s47_s29 = sshll.u32 %s886_s28, 4  ;;  %s61_s8 = sshll.u32 %s887_s30, 4  ;;  %s48_s29 = int_to_ptr.vmem [resolvable:$true] %s47_s29  ;;  %s961_s8 = int_to_ptr.vmem [resolvable:$true] %s61_s8 }
  0x27   :  { %s806_s13 = scalar_lea.hbm %s1068_s3, 2048 }
  0x28   :  { %p807_p2 = scmp.ne.s32.totalorder %s1068_s3, %s806_s13  ;;  %p810_p3 = scmp.lt.u32.totalorder %s806_s13, %s1068_s3 }
  0x2a   :  { %p812_p4 = pnand %p810_p3, %p807_p2 }
  0x2c   :  { %815 = shalt.err (!%p812_p4)
}
  0x2d   :  { %s816_s0 = scalar_lea.vmem %s48_s29, 2048  ;;  %p821_p6 = scmp.lt.s32.totalorder %s48_s29, %s48_s29 }
  0x2e   :  { %p817_p5 = scmp.ne.s32.totalorder %s48_s29, %s816_s0  ;;  %p822_p7 = scmp.lt.s32.totalorder %s816_s0, %s816_s0 }
  0x30   :  { %p823_p8 = por %p822_p7, %p821_p6 }
  0x32   :  { %p824_p9 = pnand %p823_p8, %p817_p5 }
  0x34   :  { %827 = shalt.err (!%p824_p9)
}
  0x35   :  { %53 = dma.hbm_to_vmem [thread:$0]  %s1068_s3, 2048, %s48_s29, [#allocation6], %s881_s11, %s881_s11, %s882_s12  }
  0x36   :  { %s828_s22 = scalar_lea.hbm %s1070_s5, 1024 }
  0x37   :  { %p829_p10 = scmp.ne.s32.totalorder %s1070_s5, %s828_s22  ;;  %p832_p11 = scmp.lt.u32.totalorder %s828_s22, %s1070_s5 }
  0x39   :  { %p834_p12 = pnand %p832_p11, %p829_p10 }
  0x3b   :  { %837 = shalt.err (!%p834_p12)
}
  0x3c   :  { %s838_s28 = scalar_lea.vmem %s961_s8, 1024  ;;  %p843_p0 = scmp.lt.s32.totalorder %s961_s8, %s961_s8 }
  0x3d   :  { %p839_p13 = scmp.ne.s32.totalorder %s961_s8, %s838_s28  ;;  %p844_p1 = scmp.lt.s32.totalorder %s838_s28, %s838_s28 }
  0x3f   :  { %p845_p2 = por %p844_p1, %p843_p0 }
  0x41   :  { %p846_p3 = pnand %p845_p2, %p839_p13 }
  0x43   :  { %849 = shalt.err (!%p846_p3)
}
  0x44   :  { %67 = dma.hbm_to_vmem [thread:$0]  %s1070_s5, 1024, %s961_s8, [#allocation9], %s881_s11, %s881_s11, %s882_s12  }
  0x45   :  { %872 = dma.done.wait [#allocation3], 256  }
  0x46   :  { %873 = vsyncadd [#allocation3], 4294967040 }
  0x47   :  { %874 = dma.done.wait [#allocation6], 3072  }
  0x48   :  { %875 = vsyncadd [#allocation6], 4294964224 }
  0x49   :  { %876 = dma.done.wait [#allocation9], 1024  }
  0x4a   :  { %877 = vsyncadd [#allocation9], 4294966272  ;;  %v888_v0 = vmov 0.0   ;;  %vm889_vm0 = vmmov 0   ;;  %v730_v1 = vld [vmem:[#allocation5] sm:$0xff]   ;;  %v731_v2 = vld [vmem:[#allocation5 + $0x8] sm:$0xff]  }
  0x4b   :  { %639 = vmatprep.subr.bf16.mxu0 %v888_v0  ;;  %655 = vmatprep.mubr.msk.bf16.mxu0 %vm889_vm0, %v888_v0  ;;  %v732_v3 = vld [vmem:[#allocation5 + $0x10] sm:$0xff]   ;;  %v738_v4 = vld [vmem:[#allocation7] sm:$0xff]   ;;  %v733_v5 = vld [vmem:[#allocation5 + $0x18] sm:$0xff]   ;;  %s890_s13 = smov [#allocation10]  }
  0x4c   :  { %659 = vmatprep.subr.bf16.mxu1 %v888_v0  ;;  %675 = vmatprep.mubr.msk.bf16.mxu1 %vm889_vm0, %v888_v0  ;;  %v739_v6 = vld [vmem:[#allocation7 + $0x8] sm:$0xff]   ;;  %v734_v7 = vld [vmem:[#allocation5 + $0x20] sm:$0xff]   ;;  %v740_v8 = vld [vmem:[#allocation7 + $0x10] sm:$0xff]   ;;  %s552_s14 = sshll.u32 %s890_s13, 4  ;;  %s553_s14 = int_to_ptr.vmem [resolvable:$true] %s552_s14 }
  0x4d   :  { %640 = vmatpush3.bf16.msra.mxu0 %v730_v1  ;;  %660 = vmatpush3.bf16.msra.mxu1 %v738_v4  ;;  %v735_v9 = vld [vmem:[#allocation5 + $0x28] sm:$0xff]   ;;  %v741_v10 = vld [vmem:[#allocation7 + $0x18] sm:$0xff]   ;;  %v736_v11 = vld [vmem:[#allocation5 + $0x30] sm:$0xff]   ;;  %p855_p5 = scmp.lt.s32.totalorder %s553_s14, %s553_s14 }
  0x4e   :  { %641 = vmatprep.subr.bf16.mxu0 %v888_v0  ;;  %661 = vmatprep.subr.bf16.mxu1 %v888_v0  ;;  %v742_v12 = vld [vmem:[#allocation7 + $0x20] sm:$0xff]   ;;  %v737_v13 = vld [vmem:[#allocation5 + $0x38] sm:$0xff]   ;;  %v83_v14 = vld [vmem:[#allocation2] sm:$0xff] }
  0x4f   :  { %v84_v15 = vld [vmem:[#allocation2 + $0x8] sm:$0xff]  ;;  %v743_v16 = vld [vmem:[#allocation7 + $0x28] sm:$0xff]   ;;  %v744_v18 = vld [vmem:[#allocation7 + $0x30] sm:$0xff]  }
  0x50   :  { %v85_v17 = vpack.c.bf16 %v84_v15, %v83_v14  ;;  %v745_v19 = vld [vmem:[#allocation7 + $0x38] sm:$0xff]   ;;  %v746_v20 = vld [vmem:[#allocation7 + $0x40] sm:$0xff]   ;;  %v747_v21 = vld [vmem:[#allocation7 + $0x48] sm:$0xff]  }
  0x51   :  { %642 = vmatpush3.bf16.msra.mxu0 %v731_v2  ;;  %662 = vmatpush3.bf16.msra.mxu1 %v739_v6  ;;  %v748_v22 = vld [vmem:[#allocation7 + $0x50] sm:$0xff]   ;;  %v749_v23 = vld [vmem:[#allocation7 + $0x58] sm:$0xff]   ;;  %v750_v24 = vld [vmem:[#allocation7 + $0x60] sm:$0xff]  }
  0x52   :  { %643 = vmatprep.subr.bf16.mxu0 %v888_v0  ;;  %663 = vmatprep.subr.bf16.mxu1 %v888_v0  ;;  %v751_v25 = vld [vmem:[#allocation7 + $0x68] sm:$0xff]   ;;  %v566_v26 = vld [vmem:[%s1067_s2] ss:$0 sm:$0xff]  ;;  %v753_v37 = vld [vmem:[#allocation7 + $0x78] sm:$0xff]  }
  0x53   :  { %v752_v36 = vld [vmem:[#allocation7 + $0x70] sm:$0xff]   ;;  %v754_v38 = vld [vmem:[#allocation8] sm:$0xff]   ;;  %v755_v39 = vld [vmem:[#allocation8 + $0x8] sm:$0xff]  }
  0x54   :  { %v756_v40 = vld [vmem:[#allocation8 + $0x10] sm:$0xff]   ;;  %v757_v41 = vld [vmem:[#allocation8 + $0x18] sm:$0xff]   ;;  %v758_v42 = vld [vmem:[#allocation8 + $0x20] sm:$0xff]  }
  0x55   :  { %644 = vmatpush3.bf16.msra.mxu0 %v732_v3  ;;  %664 = vmatpush3.bf16.msra.mxu1 %v740_v8  ;;  %v759_v43 = vld [vmem:[#allocation8 + $0x28] sm:$0xff]   ;;  %v575_v44 = vld [vmem:[%s1069_s4] ss:$0 sm:$0xff]  ;;  %v761_v55 = vld [vmem:[#allocation8 + $0x38] sm:$0xff]  }
  0x56   :  { %645 = vmatprep.subr.bf16.mxu0 %v888_v0  ;;  %665 = vmatprep.subr.bf16.mxu1 %v888_v0  ;;  %v760_v54 = vld [vmem:[#allocation8 + $0x30] sm:$0xff]  }
  0x57   :  { %v585_v56 = vld [vmem:[%s1069_s4 + $0x1] ss:$0 sm:$0xff]  ;;  %s850_s4 = scalar_lea.vmem %s553_s14, 256 }
  0x58   :  { %p851_p4 = scmp.ne.s32.totalorder %s553_s14, %s850_s4  ;;  %p856_p6 = scmp.lt.s32.totalorder %s850_s4, %s850_s4 }
  0x59   :  { %646 = vmatpush3.bf16.msra.mxu0 %v733_v5  ;;  %666 = vmatpush3.bf16.msra.mxu1 %v741_v10 }
  0x5a   :  { %647 = vmatprep.subr.bf16.mxu0 %v888_v0  ;;  %667 = vmatprep.subr.bf16.mxu1 %v888_v0  ;;  %p857_p7 = por %p856_p6, %p855_p5 }
  0x5c   :  { %p858_p8 = pnand %p857_p7, %p851_p4 }
  0x5d   :  { %648 = vmatpush3.bf16.msra.mxu0 %v734_v7  ;;  %668 = vmatpush3.bf16.msra.mxu1 %v742_v12 }
  0x5e   :  { %649 = vmatprep.subr.bf16.mxu0 %v888_v0  ;;  %669 = vmatprep.subr.bf16.mxu1 %v888_v0 }
  0x61   :  { %650 = vmatpush3.bf16.msra.mxu0 %v735_v9  ;;  %670 = vmatpush3.bf16.msra.mxu1 %v743_v16 }
  0x62   :  { %651 = vmatprep.subr.bf16.mxu0 %v888_v0  ;;  %671 = vmatprep.subr.bf16.mxu1 %v888_v0 }
  0x65   :  { %652 = vmatpush3.bf16.msra.mxu0 %v736_v11  ;;  %672 = vmatpush3.bf16.msra.mxu1 %v744_v18 }
  0x66   :  { %653 = vmatprep.subr.bf16.mxu0 %v888_v0  ;;  %673 = vmatprep.subr.bf16.mxu1 %v888_v0 }
  0x69   :  { %654 = vmatpush3.bf16.msra.mxu0 %v737_v13  ;;  %674 = vmatpush3.bf16.msra.mxu1 %v745_v19 }
  0x6a   :  { %679 = vmatprep.subr.bf16.mxu0 %v888_v0  ;;  %699 = vmatprep.subr.bf16.mxu1 %v888_v0 }
  0x6c   :  { %656 = vmatmul.mubr.bf16.vlgmr.msra.gmra.mrb[0].mxu0 %v85_v17 }
  0x6d   :  { %695 = vmatprep.mubr.msk.bf16.mxu0 %vm889_vm0, %v888_v0  ;;  %680 = vmatpush3.bf16.msra.mxu0 %v746_v20 }
  0x6e   :  { %681 = vmatprep.subr.bf16.mxu0 %v888_v0 }
  0x71   :  { %682 = vmatpush3.bf16.msra.mxu0 %v747_v21 }
  0x72   :  { %683 = vmatprep.subr.bf16.mxu0 %v888_v0 }
  0x75   :  { %684 = vmatpush3.bf16.msra.mxu0 %v748_v22 }
  0x76   :  { %685 = vmatprep.subr.bf16.mxu0 %v888_v0 }
  0x79   :  { %686 = vmatpush3.bf16.msra.mxu0 %v749_v23 }
  0x7a   :  { %687 = vmatprep.subr.bf16.mxu0 %v888_v0 }
  0x7d   :  { %688 = vmatpush3.bf16.msra.mxu0 %v750_v24 }
  0x7e   :  { %689 = vmatprep.subr.bf16.mxu0 %v888_v0 }
  0x81   :  { %690 = vmatpush3.bf16.msra.mxu0 %v751_v25 }
  0x82   :  { %691 = vmatprep.subr.bf16.mxu0 %v888_v0 }
  0x85   :  { %692 = vmatpush3.bf16.msra.mxu0 %v752_v36 }
  0x86   :  { %693 = vmatprep.subr.bf16.mxu0 %v888_v0 }
  0x89   :  { %694 = vmatpush3.bf16.msra.mxu0 %v753_v37 }
 0x13f   :  { %v191_v27 = vpop.f32.mrb[0].mxu0 }
 0x140   :  { %v192_v28 = vadd.f32 %v566_v26, %v191_v27  ;;  %v657_v29 = vpop.f32.mrb[1].mxu0 }
 0x141   :  { %v194_v30 = vpop.f32.mrb[2].mxu0 }
 0x142   :  { %v195_v31 = vadd.f32 %v566_v26, %v194_v30  ;;  %v658_v32 = vpop.f32.mrb[3].mxu0  ;;  %v198_v33 = vmax.f32 %v192_v28, 0.0 }
 0x144   :  { %v199_v34 = vmax.f32 %v195_v31, 0.0 }
 0x146   :  { %v200_v35 = vpack.c.bf16 %v199_v34, %v198_v33 }
 0x148   :  { %676 = vmatmul.mubr.bf16.vlgmr.msra.gmra.mrb[0].mxu1 %v200_v35 }
 0x149   :  { %715 = vmatprep.mubr.msk.bf16.mxu1 %vm889_vm0, %v888_v0  ;;  %700 = vmatpush3.bf16.msra.mxu1 %v754_v38 }
 0x14a   :  { %701 = vmatprep.subr.bf16.mxu1 %v888_v0 }
 0x14d   :  { %702 = vmatpush3.bf16.msra.mxu1 %v755_v39 }
 0x14e   :  { %703 = vmatprep.subr.bf16.mxu1 %v888_v0 }
 0x151   :  { %704 = vmatpush3.bf16.msra.mxu1 %v756_v40 }
 0x152   :  { %705 = vmatprep.subr.bf16.mxu1 %v888_v0 }
 0x155   :  { %706 = vmatpush3.bf16.msra.mxu1 %v757_v41 }
 0x156   :  { %707 = vmatprep.subr.bf16.mxu1 %v888_v0 }
 0x159   :  { %708 = vmatpush3.bf16.msra.mxu1 %v758_v42 }
 0x15a   :  { %709 = vmatprep.subr.bf16.mxu1 %v888_v0 }
 0x15d   :  { %710 = vmatpush3.bf16.msra.mxu1 %v759_v43 }
 0x15e   :  { %711 = vmatprep.subr.bf16.mxu1 %v888_v0 }
 0x161   :  { %712 = vmatpush3.bf16.msra.mxu1 %v760_v54 }
 0x162   :  { %713 = vmatprep.subr.bf16.mxu1 %v888_v0  ;;  %v594_v0 = vld [vmem:[%s1071_s6] ss:$0 sm:$0xff] }
 0x165   :  { %714 = vmatpush3.bf16.msra.mxu1 %v761_v55 }
 0x21b   :  { %v306_v45 = vpop.f32.mrb[0].mxu1 }
 0x21c   :  { %v307_v46 = vadd.f32 %v575_v44, %v306_v45  ;;  %v677_v47 = vpop.f32.mrb[1].mxu1 }
 0x21d   :  { %v309_v48 = vpop.f32.mrb[2].mxu1 }
 0x21e   :  { %v310_v49 = vadd.f32 %v575_v44, %v309_v48  ;;  %v678_v50 = vpop.f32.mrb[3].mxu1  ;;  %v313_v51 = vmax.f32 %v307_v46, 0.0 }
 0x220   :  { %v314_v52 = vmax.f32 %v310_v49, 0.0 }
 0x222   :  { %v315_v53 = vpack.c.bf16 %v314_v52, %v313_v51 }
 0x224   :  { %696 = vmatmul.mubr.bf16.vlgmr.msra.gmra.mrb[4].mxu0 %v315_v53 }
 0x2f7   :  { %v423_v57 = vpop.f32.mrb[4].mxu0 }
 0x2f8   :  { %v424_v58 = vadd.f32 %v585_v56, %v423_v57  ;;  %v697_v59 = vpop.f32.mrb[5].mxu0 }
 0x2f9   :  { %v426_v60 = vpop.f32.mrb[6].mxu0 }
 0x2fa   :  { %v427_v61 = vadd.f32 %v585_v56, %v426_v60  ;;  %v698_v62 = vpop.f32.mrb[7].mxu0  ;;  %v430_v63 = vmax.f32 %v424_v58, 0.0 }
 0x2fc   :  { %v431_v1 = vmax.f32 %v427_v61, 0.0 }
 0x2fe   :  { %v432_v2 = vpack.c.bf16 %v431_v1, %v430_v63 }
 0x300   :  { %716 = vmatmul.mubr.bf16.vlgmr.msra.gmra.mrb[4].mxu1 %v432_v2 }
 0x3d3   :  { %v538_v3 = vpop.f32.mrb[4].mxu1 }
 0x3d4   :  { %v539_v4 = vadd.f32 %v594_v0, %v538_v3  ;;  %v717_v5 = vpop.f32.mrb[5].mxu1 }
 0x3d5   :  { %v541_v6 = vpop.f32.mrb[6].mxu1 }
 0x3d6   :  { %545 = vst [vmem:[#allocation10] sm:$0xff] %v539_v4  ;;  %v542_v7 = vadd.f32 %v594_v0, %v541_v6  ;;  %v718_v8 = vpop.f32.mrb[7].mxu1 }
 0x3d8   :  { %546 = vst [vmem:[#allocation10 + $0x8] sm:$0xff] %v542_v7 }
 0x3d9   :  { %861 = shalt.err (!%p858_p8)
}
 0x3da   :  { %s862_s17 = scalar_lea.hbm %s1072_s7, 256 }
 0x3db   :  { %p863_p9 = scmp.ne.s32.totalorder %s1072_s7, %s862_s17  ;;  %p866_p10 = scmp.lt.u32.totalorder %s862_s17, %s1072_s7 }
 0x3dd   :  { %p868_p11 = pnand %p866_p10, %p863_p9 }
 0x3df   :  { %871 = shalt.err (!%p868_p11)
}
 0x3e0   :  { %558 = dma.vmem_to_hbm [thread:$0]  %s553_s14, 256, %s1072_s7, [#allocation4], %s884_s1, %s884_s1, %s885_s25  }
 0x3e1   :  { %878 = dma.done.wait [#allocation4], 256  }
 0x3e2   :  { %879 = vsyncadd [#allocation4], 4294967040 }
 0x3e3   :  { %562 = vsyncpa [#allocation3], 1 }
 0x3e4   :  { %563 = vsyncpa [#allocation6], 1 }
 0x3e5   :  { %564 = vsyncpa [#allocation9], 1 }
 0x3e6   :  { %565 = vsyncpa [#allocation4], 1 }

// kernel: tpu_custom_call.1
= control target key start
LH: loop header
LB: loop body
LE: loop exit
PB: predicated region body
PF: predicated region fallthrough
CT: control target
= control target key end

     0   :  { %12 = vsyncpa [#allocation3], 0  ;;  %s1065_s0 = inlined_call_operand.hbm [shape: f32[16,128], index: 0, kind: input, shape index: {}]   ;;  %s1066_s1 = inlined_call_operand.hbm [shape: bf16[128,128], index: 1, kind: input, shape index: {}]   ;;  %s1067_s2 = inlined_call_operand.vmem [shape: f32[1,128], index: 2, kind: input, shape index: {}]   ;;  %s1068_s3 = inlined_call_operand.hbm [shape: bf16[2,128,128], index: 3, kind: input, shape index: {}]   ;;  %s1069_s4 = inlined_call_operand.vmem [shape: f32[2,1,128], index: 4, kind: input, shape index: {}]   ;;  %s1070_s5 = inlined_call_operand.hbm [shape: bf16[128,128], index: 5, kind: input, shape index: {}]   ;;  %s1071_s6 = inlined_call_operand.vmem [shape: f32[1,128], index: 6, kind: input, shape index: {}]   ;;  %s1072_s7 = inlined_call_operand.hbm [shape: f32[16,128], index: 7, kind: output, shape index: {}]  }
   0x1   :  { %13 = vsyncpa [#allocation6], 0 }
   0x2   :  { %14 = vsyncpa [#allocation9], 0 }
   0x3   :  { %15 = vsyncpa [#allocation4], 0  ;;  %s880_s24 = smov [#allocation5]   ;;  %s762_s28 = scalar_lea.hbm %s1066_s1, 1024 }
   0x4   :  { %s33_s25 = sshll.u32 %s880_s24, 4  ;;  %p763_p0 = scmp.ne.s32.totalorder %s1066_s1, %s762_s28  ;;  %s34_s25 = int_to_ptr.vmem [resolvable:$true] %s33_s25 }
   0x5   :  { %p766_p1 = scmp.lt.u32.totalorder %s762_s28, %s1066_s1 }
   0x7   :  { %p768_p2 = pnand %p766_p1, %p763_p0 }
   0x9   :  { %771 = shalt.err (!%p768_p2)
}
   0xa   :  { %s772_s10 = scalar_lea.vmem %s34_s25, 1024  ;;  %p777_p4 = scmp.lt.s32.totalorder %s34_s25, %s34_s25 }
   0xb   :  { %p773_p3 = scmp.ne.s32.totalorder %s34_s25, %s772_s10  ;;  %p778_p5 = scmp.lt.s32.totalorder %s772_s10, %s772_s10 }
   0xd   :  { %p779_p6 = por %p778_p5, %p777_p4 }
   0xf   :  { %p780_p7 = pnand %p779_p6, %p773_p3 }
  0x11   :  { %783 = shalt.err (!%p780_p7)
}
  0x12   :  { %s881_s11 = smov 64   ;;  %s882_s12 = smov 4  }
  0x13   :  { %39 = dma.hbm_to_vmem [thread:$0]  %s1066_s1, 1024, %s34_s25, [#allocation6], %s881_s11, %s881_s11, %s882_s12  }
  0x14   :  { %s883_s15 = smov [#allocation2]   ;;  %s784_s19 = scalar_lea.hbm %s1065_s0, 256 }
  0x15   :  { %s21_s16 = sshll.u32 %s883_s15, 4  ;;  %p785_p8 = scmp.ne.s32.totalorder %s1065_s0, %s784_s19  ;;  %s22_s16 = int_to_ptr.vmem [resolvable:$true] %s21_s16 }
  0x16   :  { %p788_p9 = scmp.lt.u32.totalorder %s784_s19, %s1065_s0 }
  0x18   :  { %p790_p10 = pnand %p788_p9, %p785_p8 }
  0x1a   :  { %793 = shalt.err (!%p790_p10)
}
  0x1b   :  { %s794_s24 = scalar_lea.vmem %s22_s16, 256  ;;  %p799_p12 = scmp.lt.s32.totalorder %s22_s16, %s22_s16 }
  0x1c   :  { %p795_p11 = scmp.ne.s32.totalorder %s22_s16, %s794_s24  ;;  %p800_p13 = scmp.lt.s32.totalorder %s794_s24, %s794_s24 }
  0x1e   :  { %p801_p0 = por %p800_p13, %p799_p12 }
  0x20   :  { %p802_p1 = pnand %p801_p0, %p795_p11 }
  0x22   :  { %805 = shalt.err (!%p802_p1)
}
  0x23   :  { %s884_s1 = smov 128   ;;  %s885_s25 = smov 8  }
  0x24   :  { %27 = dma.hbm_to_vmem [thread:$0]  %s1065_s0, 256, %s22_s16, [#allocation3], %s884_s1, %s884_s1, %s885_s25  }
  0x25   :  { %s886_s28 = smov [#allocation7]   ;;  %s887_s30 = smov [#allocation8]  }
  0x26   :  { %s47_s29 = sshll.u32 %s886_s28, 4  ;;  %s61_s8 = sshll.u32 %s887_s30, 4  ;;  %s48_s29 = int_to_ptr.vmem [resolvable:$true] %s47_s29  ;;  %s961_s8 = int_to_ptr.vmem [resolvable:$true] %s61_s8 }
  0x27   :  { %s806_s13 = scalar_lea.hbm %s1068_s3, 2048 }
  0x28   :  { %p807_p2 = scmp.ne.s32.totalorder %s1068_s3, %s806_s13  ;;  %p810_p3 = scmp.lt.u32.totalorder %s806_s13, %s1068_s3 }
  0x2a   :  { %p812_p4 = pnand %p810_p3, %p807_p2 }
  0x2c   :  { %815 = shalt.err (!%p812_p4)
}
  0x2d   :  { %s816_s0 = scalar_lea.vmem %s48_s29, 2048  ;;  %p821_p6 = scmp.lt.s32.totalorder %s48_s29, %s48_s29 }
  0x2e   :  { %p817_p5 = scmp.ne.s32.totalorder %s48_s29, %s816_s0  ;;  %p822_p7 = scmp.lt.s32.totalorder %s816_s0, %s816_s0 }
  0x30   :  { %p823_p8 = por %p822_p7, %p821_p6 }
  0x32   :  { %p824_p9 = pnand %p823_p8, %p817_p5 }
  0x34   :  { %827 = shalt.err (!%p824_p9)
}
  0x35   :  { %53 = dma.hbm_to_vmem [thread:$0]  %s1068_s3, 2048, %s48_s29, [#allocation6], %s881_s11, %s881_s11, %s882_s12  }
  0x36   :  { %s828_s22 = scalar_lea.hbm %s1070_s5, 1024 }
  0x37   :  { %p829_p10 = scmp.ne.s32.totalorder %s1070_s5, %s828_s22  ;;  %p832_p11 = scmp.lt.u32.totalorder %s828_s22, %s1070_s5 }
  0x39   :  { %p834_p12 = pnand %p832_p11, %p829_p10 }
  0x3b   :  { %837 = shalt.err (!%p834_p12)
}
  0x3c   :  { %s838_s28 = scalar_lea.vmem %s961_s8, 1024  ;;  %p843_p0 = scmp.lt.s32.totalorder %s961_s8, %s961_s8 }
  0x3d   :  { %p839_p13 = scmp.ne.s32.totalorder %s961_s8, %s838_s28  ;;  %p844_p1 = scmp.lt.s32.totalorder %s838_s28, %s838_s28 }
  0x3f   :  { %p845_p2 = por %p844_p1, %p843_p0 }
  0x41   :  { %p846_p3 = pnand %p845_p2, %p839_p13 }
  0x43   :  { %849 = shalt.err (!%p846_p3)
}
  0x44   :  { %67 = dma.hbm_to_vmem [thread:$0]  %s1070_s5, 1024, %s961_s8, [#allocation9], %s881_s11, %s881_s11, %s882_s12  }
  0x45   :  { %872 = dma.done.wait [#allocation3], 256  }
  0x46   :  { %873 = vsyncadd [#allocation3], 4294967040 }
  0x47   :  { %874 = dma.done.wait [#allocation6], 3072  }
  0x48   :  { %875 = vsyncadd [#allocation6], 4294964224 }
  0x49   :  { %876 = dma.done.wait [#allocation9], 1024  }
  0x4a   :  { %877 = vsyncadd [#allocation9], 4294966272  ;;  %v888_v0 = vmov 0.0   ;;  %vm889_vm0 = vmmov 0   ;;  %v730_v1 = vld [vmem:[#allocation5] sm:$0xff]   ;;  %v731_v2 = vld [vmem:[#allocation5 + $0x8] sm:$0xff]  }
  0x4b   :  { %639 = vmatprep.subr.bf16.mxu0 %v888_v0  ;;  %655 = vmatprep.mubr.msk.bf16.mxu0 %vm889_vm0, %v888_v0  ;;  %v732_v3 = vld [vmem:[#allocation5 + $0x10] sm:$0xff]   ;;  %v738_v4 = vld [vmem:[#allocation7] sm:$0xff]   ;;  %v733_v5 = vld [vmem:[#allocation5 + $0x18] sm:$0xff]   ;;  %s890_s13 = smov [#allocation10]  }
  0x4c   :  { %659 = vmatprep.subr.bf16.mxu1 %v888_v0  ;;  %675 = vmatprep.mubr.msk.bf16.mxu1 %vm889_vm0, %v888_v0  ;;  %v739_v6 = vld [vmem:[#allocation7 + $0x8] sm:$0xff]   ;;  %v734_v7 = vld [vmem:[#allocation5 + $0x20] sm:$0xff]   ;;  %v740_v8 = vld [vmem:[#allocation7 + $0x10] sm:$0xff]   ;;  %s552_s14 = sshll.u32 %s890_s13, 4  ;;  %s553_s14 = int_to_ptr.vmem [resolvable:$true] %s552_s14 }
  0x4d   :  { %640 = vmatpush3.bf16.msra.mxu0 %v730_v1  ;;  %660 = vmatpush3.bf16.msra.mxu1 %v738_v4  ;;  %v735_v9 = vld [vmem:[#allocation5 + $0x28] sm:$0xff]   ;;  %v741_v10 = vld [vmem:[#allocation7 + $0x18] sm:$0xff]   ;;  %v736_v11 = vld [vmem:[#allocation5 + $0x30] sm:$0xff]   ;;  %p855_p5 = scmp.lt.s32.totalorder %s553_s14, %s553_s14 }
  0x4e   :  { %641 = vmatprep.subr.bf16.mxu0 %v888_v0  ;;  %661 = vmatprep.subr.bf16.mxu1 %v888_v0  ;;  %v742_v12 = vld [vmem:[#allocation7 + $0x20] sm:$0xff]   ;;  %v737_v13 = vld [vmem:[#allocation5 + $0x38] sm:$0xff]   ;;  %v83_v14 = vld [vmem:[#allocation2] sm:$0xff] }
  0x4f   :  { %v84_v15 = vld [vmem:[#allocation2 + $0x8] sm:$0xff]  ;;  %v743_v16 = vld [vmem:[#allocation7 + $0x28] sm:$0xff]   ;;  %v744_v18 = vld [vmem:[#allocation7 + $0x30] sm:$0xff]  }
  0x50   :  { %v85_v17 = vpack.c.bf16 %v84_v15, %v83_v14  ;;  %v745_v19 = vld [vmem:[#allocation7 + $0x38] sm:$0xff]   ;;  %v746_v20 = vld [vmem:[#allocation7 + $0x40] sm:$0xff]   ;;  %v747_v21 = vld [vmem:[#allocation7 + $0x48] sm:$0xff]  }
  0x51   :  { %642 = vmatpush3.bf16.msra.mxu0 %v731_v2  ;;  %662 = vmatpush3.bf16.msra.mxu1 %v739_v6  ;;  %v748_v22 = vld [vmem:[#allocation7 + $0x50] sm:$0xff]   ;;  %v749_v23 = vld [vmem:[#allocation7 + $0x58] sm:$0xff]   ;;  %v750_v24 = vld [vmem:[#allocation7 + $0x60] sm:$0xff]  }
  0x52   :  { %643 = vmatprep.subr.bf16.mxu0 %v888_v0  ;;  %663 = vmatprep.subr.bf16.mxu1 %v888_v0  ;;  %v751_v25 = vld [vmem:[#allocation7 + $0x68] sm:$0xff]   ;;  %v566_v26 = vld [vmem:[%s1067_s2] ss:$0 sm:$0xff]  ;;  %v753_v37 = vld [vmem:[#allocation7 + $0x78] sm:$0xff]  }
  0x53   :  { %v752_v36 = vld [vmem:[#allocation7 + $0x70] sm:$0xff]   ;;  %v754_v38 = vld [vmem:[#allocation8] sm:$0xff]   ;;  %v755_v39 = vld [vmem:[#allocation8 + $0x8] sm:$0xff]  }
  0x54   :  { %v756_v40 = vld [vmem:[#allocation8 + $0x10] sm:$0xff]   ;;  %v757_v41 = vld [vmem:[#allocation8 + $0x18] sm:$0xff]   ;;  %v758_v42 = vld [vmem:[#allocation8 + $0x20] sm:$0xff]  }
  0x55   :  { %644 = vmatpush3.bf16.msra.mxu0 %v732_v3  ;;  %664 = vmatpush3.bf16.msra.mxu1 %v740_v8  ;;  %v759_v43 = vld [vmem:[#allocation8 + $0x28] sm:$0xff]   ;;  %v575_v44 = vld [vmem:[%s1069_s4] ss:$0 sm:$0xff]  ;;  %v761_v55 = vld [vmem:[#allocation8 + $0x38] sm:$0xff]  }
  0x56   :  { %645 = vmatprep.subr.bf16.mxu0 %v888_v0  ;;  %665 = vmatprep.subr.bf16.mxu1 %v888_v0  ;;  %v760_v54 = vld [vmem:[#allocation8 + $0x30] sm:$0xff]  }
  0x57   :  { %v585_v56 = vld [vmem:[%s1069_s4 + $0x1] ss:$0 sm:$0xff]  ;;  %s850_s4 = scalar_lea.vmem %s553_s14, 256 }
  0x58   :  { %p851_p4 = scmp.ne.s32.totalorder %s553_s14, %s850_s4  ;;  %p856_p6 = scmp.lt.s32.totalorder %s850_s4, %s850_s4 }
  0x59   :  { %646 = vmatpush3.bf16.msra.mxu0 %v733_v5  ;;  %666 = vmatpush3.bf16.msra.mxu1 %v741_v10 }
  0x5a   :  { %647 = vmatprep.subr.bf16.mxu0 %v888_v0  ;;  %667 = vmatprep.subr.bf16.mxu1 %v888_v0  ;;  %p857_p7 = por %p856_p6, %p855_p5 }
  0x5c   :  { %p858_p8 = pnand %p857_p7, %p851_p4 }
  0x5d   :  { %648 = vmatpush3.bf16.msra.mxu0 %v734_v7  ;;  %668 = vmatpush3.bf16.msra.mxu1 %v742_v12 }
  0x5e   :  { %649 = vmatprep.subr.bf16.mxu0 %v888_v0  ;;  %669 = vmatprep.subr.bf16.mxu1 %v888_v0 }
  0x61   :  { %650 = vmatpush3.bf16.msra.mxu0 %v735_v9  ;;  %670 = vmatpush3.bf16.msra.mxu1 %v743_v16 }
  0x62   :  { %651 = vmatprep.subr.bf16.mxu0 %v888_v0  ;;  %671 = vmatprep.subr.bf16.mxu1 %v888_v0 }
  0x65   :  { %652 = vmatpush3.bf16.msra.mxu0 %v736_v11  ;;  %672 = vmatpush3.bf16.msra.mxu1 %v744_v18 }
  0x66   :  { %653 = vmatprep.subr.bf16.mxu0 %v888_v0  ;;  %673 = vmatprep.subr.bf16.mxu1 %v888_v0 }
  0x69   :  { %654 = vmatpush3.bf16.msra.mxu0 %v737_v13  ;;  %674 = vmatpush3.bf16.msra.mxu1 %v745_v19 }
  0x6a   :  { %679 = vmatprep.subr.bf16.mxu0 %v888_v0  ;;  %699 = vmatprep.subr.bf16.mxu1 %v888_v0 }
  0x6c   :  { %656 = vmatmul.mubr.bf16.vlgmr.msra.gmra.mrb[0].mxu0 %v85_v17 }
  0x6d   :  { %695 = vmatprep.mubr.msk.bf16.mxu0 %vm889_vm0, %v888_v0  ;;  %680 = vmatpush3.bf16.msra.mxu0 %v746_v20 }
  0x6e   :  { %681 = vmatprep.subr.bf16.mxu0 %v888_v0 }
  0x71   :  { %682 = vmatpush3.bf16.msra.mxu0 %v747_v21 }
  0x72   :  { %683 = vmatprep.subr.bf16.mxu0 %v888_v0 }
  0x75   :  { %684 = vmatpush3.bf16.msra.mxu0 %v748_v22 }
  0x76   :  { %685 = vmatprep.subr.bf16.mxu0 %v888_v0 }
  0x79   :  { %686 = vmatpush3.bf16.msra.mxu0 %v749_v23 }
  0x7a   :  { %687 = vmatprep.subr.bf16.mxu0 %v888_v0 }
  0x7d   :  { %688 = vmatpush3.bf16.msra.mxu0 %v750_v24 }
  0x7e   :  { %689 = vmatprep.subr.bf16.mxu0 %v888_v0 }
  0x81   :  { %690 = vmatpush3.bf16.msra.mxu0 %v751_v25 }
  0x82   :  { %691 = vmatprep.subr.bf16.mxu0 %v888_v0 }
  0x85   :  { %692 = vmatpush3.bf16.msra.mxu0 %v752_v36 }
  0x86   :  { %693 = vmatprep.subr.bf16.mxu0 %v888_v0 }
  0x89   :  { %694 = vmatpush3.bf16.msra.mxu0 %v753_v37 }
 0x13f   :  { %v191_v27 = vpop.f32.mrb[0].mxu0 }
 0x140   :  { %v192_v28 = vadd.f32 %v566_v26, %v191_v27  ;;  %v657_v29 = vpop.f32.mrb[1].mxu0 }
 0x141   :  { %v194_v30 = vpop.f32.mrb[2].mxu0 }
 0x142   :  { %v195_v31 = vadd.f32 %v566_v26, %v194_v30  ;;  %v658_v32 = vpop.f32.mrb[3].mxu0  ;;  %v198_v33 = vmax.f32 %v192_v28, 0.0 }
 0x144   :  { %v199_v34 = vmax.f32 %v195_v31, 0.0 }
 0x146   :  { %v200_v35 = vpack.c.bf16 %v199_v34, %v198_v33 }
 0x148   :  { %676 = vmatmul.mubr.bf16.vlgmr.msra.gmra.mrb[0].mxu1 %v200_v35 }
 0x149   :  { %715 = vmatprep.mubr.msk.bf16.mxu1 %vm889_vm0, %v888_v0  ;;  %700 = vmatpush3.bf16.msra.mxu1 %v754_v38 }
 0x14a   :  { %701 = vmatprep.subr.bf16.mxu1 %v888_v0 }
 0x14d   :  { %702 = vmatpush3.bf16.msra.mxu1 %v755_v39 }
 0x14e   :  { %703 = vmatprep.subr.bf16.mxu1 %v888_v0 }
 0x151   :  { %704 = vmatpush3.bf16.msra.mxu1 %v756_v40 }
 0x152   :  { %705 = vmatprep.subr.bf16.mxu1 %v888_v0 }
 0x155   :  { %706 = vmatpush3.bf16.msra.mxu1 %v757_v41 }
 0x156   :  { %707 = vmatprep.subr.bf16.mxu1 %v888_v0 }
 0x159   :  { %708 = vmatpush3.bf16.msra.mxu1 %v758_v42 }
 0x15a   :  { %709 = vmatprep.subr.bf16.mxu1 %v888_v0 }
 0x15d   :  { %710 = vmatpush3.bf16.msra.mxu1 %v759_v43 }
 0x15e   :  { %711 = vmatprep.subr.bf16.mxu1 %v888_v0 }
 0x161   :  { %712 = vmatpush3.bf16.msra.mxu1 %v760_v54 }
 0x162   :  { %713 = vmatprep.subr.bf16.mxu1 %v888_v0  ;;  %v594_v0 = vld [vmem:[%s1071_s6] ss:$0 sm:$0xff] }
 0x165   :  { %714 = vmatpush3.bf16.msra.mxu1 %v761_v55 }
 0x21b   :  { %v306_v45 = vpop.f32.mrb[0].mxu1 }
 0x21c   :  { %v307_v46 = vadd.f32 %v575_v44, %v306_v45  ;;  %v677_v47 = vpop.f32.mrb[1].mxu1 }
 0x21d   :  { %v309_v48 = vpop.f32.mrb[2].mxu1 }
 0x21e   :  { %v310_v49 = vadd.f32 %v575_v44, %v309_v48  ;;  %v678_v50 = vpop.f32.mrb[3].mxu1  ;;  %v313_v51 = vmax.f32 %v307_v46, 0.0 }
 0x220   :  { %v314_v52 = vmax.f32 %v310_v49, 0.0 }
 0x222   :  { %v315_v53 = vpack.c.bf16 %v314_v52, %v313_v51 }
 0x224   :  { %696 = vmatmul.mubr.bf16.vlgmr.msra.gmra.mrb[4].mxu0 %v315_v53 }
 0x2f7   :  { %v423_v57 = vpop.f32.mrb[4].mxu0 }
 0x2f8   :  { %v424_v58 = vadd.f32 %v585_v56, %v423_v57  ;;  %v697_v59 = vpop.f32.mrb[5].mxu0 }
 0x2f9   :  { %v426_v60 = vpop.f32.mrb[6].mxu0 }
 0x2fa   :  { %v427_v61 = vadd.f32 %v585_v56, %v426_v60  ;;  %v698_v62 = vpop.f32.mrb[7].mxu0  ;;  %v430_v63 = vmax.f32 %v424_v58, 0.0 }
 0x2fc   :  { %v431_v1 = vmax.f32 %v427_v61, 0.0 }
 0x2fe   :  { %v432_v2 = vpack.c.bf16 %v431_v1, %v430_v63 }
 0x300   :  { %716 = vmatmul.mubr.bf16.vlgmr.msra.gmra.mrb[4].mxu1 %v432_v2 }
 0x3d3   :  { %v538_v3 = vpop.f32.mrb[4].mxu1 }
 0x3d4   :  { %v539_v4 = vadd.f32 %v594_v0, %v538_v3  ;;  %v717_v5 = vpop.f32.mrb[5].mxu1 }
 0x3d5   :  { %v541_v6 = vpop.f32.mrb[6].mxu1 }
 0x3d6   :  { %545 = vst [vmem:[#allocation10] sm:$0xff] %v539_v4  ;;  %v542_v7 = vadd.f32 %v594_v0, %v541_v6  ;;  %v718_v8 = vpop.f32.mrb[7].mxu1 }
 0x3d8   :  { %546 = vst [vmem:[#allocation10 + $0x8] sm:$0xff] %v542_v7 }
 0x3d9   :  { %861 = shalt.err (!%p858_p8)
}
 0x3da   :  { %s862_s17 = scalar_lea.hbm %s1072_s7, 256 }
 0x3db   :  { %p863_p9 = scmp.ne.s32.totalorder %s1072_s7, %s862_s17  ;;  %p866_p10 = scmp.lt.u32.totalorder %s862_s17, %s1072_s7 }
 0x3dd   :  { %p868_p11 = pnand %p866_p10, %p863_p9 }
 0x3df   :  { %871 = shalt.err (!%p868_p11)
}
 0x3e0   :  { %558 = dma.vmem_to_hbm [thread:$0]  %s553_s14, 256, %s1072_s7, [#allocation4], %s884_s1, %s884_s1, %s885_s25  }
 0x3e1   :  { %878 = dma.done.wait [#allocation4], 256  }
 0x3e2   :  { %879 = vsyncadd [#allocation4], 4294967040 }
 0x3e3   :  { %562 = vsyncpa [#allocation3], 1 }
 0x3e4   :  { %563 = vsyncpa [#allocation6], 1 }
 0x3e5   :  { %564 = vsyncpa [#allocation9], 1 }
 0x3e6   :  { %565 = vsyncpa [#allocation4], 1 }

</bundles_post_ra>
